<compile_context>
chip_gen: v7x
topology: tpu7x:2x2x1
jax: 0.10.0
libtpu: 0.0.40
codegen_flags: <defaults>
</compile_context>

<pallas_src>
import math
import functools

import jax
import jax.numpy as jnp
import numpy as np
from jax.experimental import pallas as pl
from jax.experimental.pallas import tpu as pltpu

# ------------------------------------------------------------------
# Small config consistent with the module's __init__
# ------------------------------------------------------------------
CONFIG = dict(
    non_causal_layers_per_layer=1,   # layers built in __init__ but unused in forward()
    mu_quantization=256,             # unused in forward()
    n_labels=8,                      # n_classes
    n_layers=4,
    max_dilation=4,                  # -> loop_factor = 3, dilations [1, 2, 4, 1]
    n_residual_channels=32,
    height=4,                        # n_in_channels (C of the NCT input)
    n_out_channels=32,               # conv_out / conv_end exist but are unused in forward()
    n_skip_channels=32,
    width=16,                        # input_length (T of the NCT input)
)
BATCH = 2

LANES = 128          # lane-dense width for the weight slab and the output tile
OUT_SUBLANES = 8     # padded output rows (>= B)


# ------------------------------------------------------------------
# Deterministic parameter init (xavier_uniform like the PyTorch module)
# ------------------------------------------------------------------
def _xavier(key, out_c, in_c, k, gain):
    fan_in, fan_out = in_c * k, out_c * k
    a = gain * math.sqrt(6.0 / (fan_in + fan_out))
    return jax.random.uniform(key, (out_c, in_c, k), jnp.float32, -a, a)


def _bias(key, out_c, fan_in):
    a = 1.0 / math.sqrt(fan_in)
    return jax.random.uniform(key, (out_c,), jnp.float32, -a, a)


def init_params(key, cfg):
    R = cfg['n_residual_channels']
    S = cfg['n_skip_channels']
    Cin = cfg['height']
    NC = cfg['n_labels']
    L = cfg['n_layers']
    g_tanh, g_relu, g_lin = 5.0 / 3.0, math.sqrt(2.0), 1.0
    ks = iter(jax.random.split(key, 64))
    p = {}
    p['conv_in_w'] = _xavier(next(ks), R, Cin, 1, g_lin)              # (R, Cin, 1)
    p['conv_in_b'] = _bias(next(ks), R, Cin)
    p['dilate_w'] = jnp.stack([_xavier(next(ks), 2 * R, R, 2, g_tanh) for _ in range(L)])
    p['dilate_b'] = jnp.stack([_bias(next(ks), 2 * R, 2 * R) for _ in range(L)])
    p['res_w'] = jnp.stack([_xavier(next(ks), R, R, 1, g_lin) for _ in range(L - 1)])
    p['res_b'] = jnp.stack([_bias(next(ks), R, R) for _ in range(L - 1)])
    p['skip_w'] = jnp.stack([_xavier(next(ks), S, R, 1, g_relu) for _ in range(L)])
    p['skip_b'] = jnp.stack([_bias(next(ks), S, R) for _ in range(L)])
    p['kw_w'] = _xavier(next(ks), NC, S, 1, g_relu)                   # conv_out_kw, no bias
    p['lin_w'] = jax.random.uniform(next(ks), (NC, NC), jnp.float32,
                                    -1 / math.sqrt(NC), 1 / math.sqrt(NC))
    p['lin_b'] = jax.random.uniform(next(ks), (NC,), jnp.float32,
                                    -1 / math.sqrt(NC), 1 / math.sqrt(NC))
    return p


# ------------------------------------------------------------------
# Pallas kernel
# ------------------------------------------------------------------
def _make_kernel(n_layers, dilations, R, S, T, BT, layer0, layer_rows, tail_base):
    def kernel(x_ref, w_ref, out_ref):
        # DEFAULT precision: single bf16 MXU pass per matmul (latency lever per review).
        dot = functools.partial(jnp.dot, preferred_element_type=jnp.float32,
                                precision=jax.lax.Precision.DEFAULT)

        # conv_in 1x1: bias is folded via the ones column of x / bias row of the slab.
        fwd = dot(x_ref[...], w_ref[0:8, 0:R])                        # (BT, R)

        # Causal masks, hoisted: per-row time index t = (b*T + t) % T; one f32 0/1
        # mask per distinct dilation, reused across layers (d=1 is used twice).
        t_idx = jax.lax.broadcasted_iota(jnp.int32, (BT, R), 0) % T
        masks = {d: (t_idx >= d).astype(jnp.float32) for d in sorted(set(dilations))}

        # Full-width running sum of the layer outputs; only lanes [R, R+S) (the skip
        # columns) are consumed at the end, so no per-layer lane extraction is needed.
        ysum = jnp.zeros((BT, LANES), jnp.float32)

        for i in range(n_layers):
            d = dilations[i]
            b0 = layer0 + i * layer_rows
            w_tap0 = w_ref[b0:b0 + R, :]                              # (R, 128) shifted tap
            w_tap1 = w_ref[b0 + R:b0 + 2 * R, :]                      # (R, 128) current tap
            w_rs   = w_ref[b0 + 2 * R:b0 + 3 * R, :]                  # (R, 128) [res | skip]
            b_dil  = w_ref[b0 + 3 * R:b0 + 3 * R + 1, :]              # (1, 128)
            b_rs   = w_ref[b0 + 3 * R + 1:b0 + 3 * R + 2, :]          # (1, 128)

            # causal "x[t - d]" tap: sublane roll (XLU) + 0/1 mask multiply.  Wrap-around
            # rows are exactly the masked rows, matching torch's causal left-pad.
            shifted = pltpu.roll(fwd, shift=d, axis=0) * masks[d]

            # dilated conv (kernel_size=2): two small matmuls, no lane concat.
            pre = dot(fwd, w_tap1) + dot(shifted, w_tap0) + b_dil     # (BT, 128)
            acts = jnp.tanh(pre[:, :R]) * jax.nn.sigmoid(pre[:, R:2 * R])  # (BT, R)

            # fused res + skip 1x1 convs: cols [0,R) res, [R,R+S) skip.
            y = dot(acts, w_rs) + b_rs                                # (BT, 128)
            if i < n_layers - 1:
                fwd = y[:, :R] + fwd
            # NOTE: on the last layer the PyTorch code adds the *stale* res_acts to
            # forward_input, but forward_input is never read afterwards, so the model
            # output is unaffected; the dead computation is skipped (res cols zeroed).
            ysum = ysum + y

        # tail: mean-pool over time (pool matrix), then conv_out_kw folded with the
        # final Linear (exact rewrite done on the host side).
        wkw_lin = w_ref[tail_base:tail_base + S, :]                   # (S, 128), lanes>=NC zero
        b_lin   = w_ref[tail_base + S:tail_base + S + 1, :]           # (1, 128)
        pool    = w_ref[tail_base + 40:tail_base + 48, 0:BT]          # (8, BT)
        pooled  = dot(pool, ysum)                                     # (8, 128)
        out_ref[...] = dot(pooled[:, R:R + S], wkw_lin) + b_lin       # lane-dense (8, 128)
    return kernel


# ------------------------------------------------------------------
# Wrapper: parameter re-layout into one lane-dense slab + pallas_call
# ------------------------------------------------------------------
def wavenet_pallas(x_nct, params, cfg):
    B, Cin, T = x_nct.shape
    R = cfg['n_residual_channels']
    S = cfg['n_skip_channels']
    NC = cfg['n_labels']
    L = cfg['n_layers']
    loop_factor = math.floor(math.log2(cfg['max_dilation'])) + 1
    dilations = [2 ** (i % loop_factor) for i in range(L)]
    BT = B * T
    f32 = jnp.float32

    assert B <= OUT_SUBLANES and NC <= LANES and BT <= LANES and Cin + 1 <= 8
    assert 2 * R <= LANES and R + S <= LANES and S + 1 <= 40

    layer_rows = ((3 * R + 2 + 7) // 8) * 8          # 104 for R=32 (8-aligned blocks)
    layer0 = 8
    tail_base = layer0 + L * layer_rows              # 8-aligned
    tail_rows = 48                                   # wkw_lin(S) + b_lin(1), pad, pool(8)

    # --- input: NCT -> (BT, 8): [x | ones | zero pad]; ones column folds conv_in bias.
    x2d = jnp.transpose(x_nct, (0, 2, 1)).reshape(BT, Cin)
    x_aug = jnp.concatenate(
        [x2d, jnp.ones((BT, 1), f32), jnp.zeros((BT, 8 - Cin - 1), f32)], axis=1)

    # --- conv_in block (slab rows 0:8): rows 0:Cin weight, row Cin bias, rest zero.
    win_blk = jnp.zeros((8, LANES), f32)
    win_blk = win_blk.at[0:Cin, 0:R].set(jnp.transpose(params['conv_in_w'][:, :, 0]))
    win_blk = win_blk.at[Cin, 0:R].set(params['conv_in_b'])

    # --- per-layer blocks: [w_tap0 | w_tap1 | w_res+skip | bias rows], 128 lanes wide.
    wd = params['dilate_w']                                             # (L, 2R, R, 2)
    w_tap0 = jnp.transpose(wd[:, :, :, 0], (0, 2, 1))                   # (L, R, 2R)
    w_tap1 = jnp.transpose(wd[:, :, :, 1], (0, 2, 1))                   # (L, R, 2R)
    wres = jnp.transpose(params['res_w'][:, :, :, 0], (0, 2, 1))        # (L-1, R, R)
    wres = jnp.concatenate([wres, jnp.zeros((1, R, R), f32)], axis=0)   # last layer: dead
    wskip = jnp.transpose(params['skip_w'][:, :, :, 0], (0, 2, 1))      # (L, R, S)
    w_rs = jnp.concatenate([wres, wskip], axis=2)                       # (L, R, R+S)
    bres = jnp.concatenate([params['res_b'], jnp.zeros((1, R), f32)], axis=0)  # (L, R)
    b_rs = jnp.concatenate([bres, params['skip_b']], axis=1)            # (L, R+S)

    layer_blks = []
    for i in range(L):
        blk = jnp.zeros((layer_rows, LANES), f32)
        blk = blk.at[0:R, 0:2 * R].set(w_tap0[i])
        blk = blk.at[R:2 * R, 0:2 * R].set(w_tap1[i])
        blk = blk.at[2 * R:3 * R, 0:R + S].set(w_rs[i])
        blk = blk.at[3 * R, 0:2 * R].set(params['dilate_b'][i])
        blk = blk.at[3 * R + 1, 0:R + S].set(b_rs[i])
        layer_blks.append(blk)

    # --- tail block: conv_out_kw folded into the Linear (exact rewrite, kept at
    #     HIGHEST precision since it runs once outside the kernel), Linear bias,
    #     and the per-batch mean-pooling matrix (8-row aligned).
    wkw = jnp.transpose(params['kw_w'][:, :, 0])                         # (S, NC)
    wkw_lin = jnp.dot(wkw, jnp.transpose(params['lin_w']),
                      precision=jax.lax.Precision.HIGHEST)               # (S, NC)
    tail_blk = jnp.zeros((tail_rows, LANES), f32)
    tail_blk = tail_blk.at[0:S, 0:NC].set(wkw_lin)
    tail_blk = tail_blk.at[S, 0:NC].set(params['lin_b'])
    pool = np.zeros((8, LANES), np.float32)
    for b in range(B):
        pool[b, b * T:(b + 1) * T] = 1.0 / T
    tail_blk = tail_blk.at[40:48, :].set(jnp.asarray(pool))

    slab = jnp.concatenate([win_blk] + layer_blks + [tail_blk], axis=0)  # (472, 128)

    vmem = pl.BlockSpec(memory_space=pltpu.MemorySpace.VMEM)
    out_pad = pl.pallas_call(
        _make_kernel(L, dilations, R, S, T, BT, layer0, layer_rows, tail_base),
        out_shape=jax.ShapeDtypeStruct((OUT_SUBLANES, LANES), jnp.float32),
        in_specs=[vmem, vmem],
        out_specs=vmem,
    )(x_aug, slab)
    return out_pad[:B, :NC]


# ------------------------------------------------------------------
# Pure-JAX reference (mirrors the PyTorch forward, NCT layout, f32 precision)
# ------------------------------------------------------------------
def wavenet_reference(x, params, cfg):
    HI = jax.lax.Precision.HIGHEST
    R = cfg['n_residual_channels']
    L = cfg['n_layers']
    T = cfg['width']
    loop_factor = math.floor(math.log2(cfg['max_dilation'])) + 1
    dilations = [2 ** (i % loop_factor) for i in range(L)]

    def conv1x1(inp, W, b=None):
        y = jnp.einsum('oi,bit->bot', W[:, :, 0], inp, precision=HI)
        return y if b is None else y + b[None, :, None]

    def causal_conv2(inp, W, b, d):
        xp = jnp.pad(inp, ((0, 0), (0, 0), (d, 0)))
        y = (jnp.einsum('oi,bit->bot', W[:, :, 0], xp[:, :, :T], precision=HI)
             + jnp.einsum('oi,bit->bot', W[:, :, 1], xp[:, :, d:d + T], precision=HI))
        return y + b[None, :, None]

    fwd = conv1x1(x, params['conv_in_w'], params['conv_in_b'])
    output = None
    for i in range(L):
        in_act = causal_conv2(fwd, params['dilate_w'][i], params['dilate_b'][i],
                              dilations[i])
        acts = jnp.tanh(in_act[:, :R, :]) * jax.nn.sigmoid(in_act[:, R:, :])
        if i < L - 1:
            res_acts = conv1x1(acts, params['res_w'][i], params['res_b'][i])
            fwd = res_acts + fwd
        skip = conv1x1(acts, params['skip_w'][i], params['skip_b'][i])
        output = skip if i == 0 else output + skip
    output = conv1x1(output, params['kw_w'])          # conv_out_kw, no bias
    output = jnp.mean(output, axis=2)                 # AvgPool1d(kernel=T) + view(B, -1)
    output = output @ params['lin_w'].T + params['lin_b']
    return output


if __name__ == "__main__":
    key = jax.random.PRNGKey(0)
    kp, kx = jax.random.split(key)
    params = init_params(kp, CONFIG)
    x = jax.random.normal(kx, (BATCH, CONFIG['height'], CONFIG['width']), jnp.float32)

    # jit the wrapper so all weight re-layout ops fuse and dispatch once.
    wavenet_jit = jax.jit(lambda xx, pp: wavenet_pallas(xx, pp, CONFIG))
    out = jax.block_until_ready(wavenet_jit(x, params))

    ref = wavenet_reference(x, params, CONFIG)
    # Kernel matmuls run at DEFAULT precision (single bf16 MXU pass) vs. the f32
    # (HIGHEST) reference, so the tolerance is 1e-2 instead of 2e-3.
    np.testing.assert_allclose(np.asarray(out), np.asarray(ref), rtol=1e-2, atol=1e-2)
    print("KERNEL_OK")
</pallas_src>

<mosaic_0001>
module attributes {stable_mosaic.version = 11 : i64} {
  func.func @kernel(%arg0: memref<32x8xf32, #tpu.memory_space<vmem>>, %arg1: memref<472x128xf32, #tpu.memory_space<vmem>>, %arg2: memref<8x128xf32, #tpu.memory_space<vmem>>) attributes {dimension_semantics = [], scalar_prefetch = 0 : i64, scratch_operands = 0 : i64, tpu.core_type = #tpu.core_type<tc>} {
    %c0 = arith.constant 0 : index
    %c0_0 = arith.constant 0 : index
    %0 = vector.load %arg0[%c0, %c0_0] : memref<32x8xf32, #tpu.memory_space<vmem>>, vector<32x8xf32>
    %c0_1 = arith.constant 0 : index
    %c0_2 = arith.constant 0 : index
    %1 = vector.load %arg1[%c0_1, %c0_2] : memref<472x128xf32, #tpu.memory_space<vmem>>, vector<8x32xf32>
    %cst = arith.constant dense<0.000000e+00> : vector<32x32xf32>
    %2 = tpu.matmul %0, %1, %cst {dimension_numbers = #tpu.dot_dimension_numbers<[1], [0], [0], [1], [0, 0, 1, 1], [], []>} : vector<32x8xf32>, vector<8x32xf32>, vector<32x32xf32> -> vector<32x32xf32>
    %3 = tpu.iota {dimensions = array<i32: 0>} : vector<32x32xi32>
    %c16_i32 = arith.constant 16 : i32
    %c0_i32 = arith.constant 0 : i32
    %4 = arith.cmpi eq, %c16_i32, %c0_i32 : i32
    %c1_i32 = arith.constant 1 : i32
    %5 = arith.select %4, %c1_i32, %c16_i32 : i32
    %6 = vector.broadcast %5 : i32 to vector<32x32xi32>
    %7 = arith.remsi %3, %6 : vector<32x32xi32>
    %c0_i32_3 = arith.constant 0 : i32
    %8 = vector.broadcast %c0_i32_3 : i32 to vector<32x32xi32>
    %9 = arith.cmpi ne, %7, %8 : vector<32x32xi32>
    %c0_i32_4 = arith.constant 0 : i32
    %10 = vector.broadcast %c0_i32_4 : i32 to vector<32x32xi32>
    %11 = arith.cmpi slt, %7, %10 : vector<32x32xi32>
    %c0_i32_5 = arith.constant 0 : i32
    %12 = arith.cmpi slt, %5, %c0_i32_5 : i32
    %13 = vector.broadcast %12 : i1 to vector<32x32xi1>
    %14 = vector.broadcast %13 : vector<32x32xi1> to vector<32x32xi1>
    %15 = arith.xori %11, %14 : vector<32x32xi1>
    %16 = arith.andi %15, %9 : vector<32x32xi1>
    %17 = vector.broadcast %5 : i32 to vector<32x32xi32>
    %18 = arith.addi %7, %17 : vector<32x32xi32>
    %19 = arith.select %16, %18, %7 : vector<32x32xi1>, vector<32x32xi32>
    %c1_i32_6 = arith.constant 1 : i32
    %20 = vector.broadcast %c1_i32_6 : i32 to vector<32x32xi32>
    %21 = arith.cmpi sge, %19, %20 : vector<32x32xi32>
    %22 = arith.extui %21 : vector<32x32xi1> to vector<32x32xi32>
    %23 = arith.sitofp %22 : vector<32x32xi32> to vector<32x32xf32>
    %c2_i32 = arith.constant 2 : i32
    %24 = vector.broadcast %c2_i32 : i32 to vector<32x32xi32>
    %25 = arith.cmpi sge, %19, %24 : vector<32x32xi32>
    %26 = arith.extui %25 : vector<32x32xi1> to vector<32x32xi32>
    %27 = arith.sitofp %26 : vector<32x32xi32> to vector<32x32xf32>
    %c4_i32 = arith.constant 4 : i32
    %28 = vector.broadcast %c4_i32 : i32 to vector<32x32xi32>
    %29 = arith.cmpi sge, %19, %28 : vector<32x32xi32>
    %30 = arith.extui %29 : vector<32x32xi1> to vector<32x32xi32>
    %31 = arith.sitofp %30 : vector<32x32xi32> to vector<32x32xf32>
    %cst_7 = arith.constant 0.000000e+00 : f32
    %32 = vector.broadcast %cst_7 : f32 to vector<32x128xf32>
    %c8 = arith.constant 8 : index
    %c0_8 = arith.constant 0 : index
    %33 = vector.load %arg1[%c8, %c0_8] : memref<472x128xf32, #tpu.memory_space<vmem>>, vector<32x128xf32>
    %c40 = arith.constant 40 : index
    %c0_9 = arith.constant 0 : index
    %34 = vector.load %arg1[%c40, %c0_9] : memref<472x128xf32, #tpu.memory_space<vmem>>, vector<32x128xf32>
    %c72 = arith.constant 72 : index
    %c0_10 = arith.constant 0 : index
    %35 = vector.load %arg1[%c72, %c0_10] : memref<472x128xf32, #tpu.memory_space<vmem>>, vector<32x128xf32>
    %c104 = arith.constant 104 : index
    %c0_11 = arith.constant 0 : index
    %36 = vector.load %arg1[%c104, %c0_11] : memref<472x128xf32, #tpu.memory_space<vmem>>, vector<1x128xf32>
    %c105 = arith.constant 105 : index
    %c0_12 = arith.constant 0 : index
    %37 = vector.load %arg1[%c105, %c0_12] : memref<472x128xf32, #tpu.memory_space<vmem>>, vector<1x128xf32>
    %c1_i32_13 = arith.constant 1 : i32
    %38 = tpu.dynamic_rotate %2 by %c1_i32_13 dim 0 : vector<32x32xf32>, i32 -> vector<32x32xf32>
    %39 = arith.mulf %38, %23 : vector<32x32xf32>
    %cst_14 = arith.constant dense<0.000000e+00> : vector<32x128xf32>
    %40 = tpu.matmul %2, %34, %cst_14 {dimension_numbers = #tpu.dot_dimension_numbers<[1], [0], [0], [1], [0, 0, 1, 1], [], []>} : vector<32x32xf32>, vector<32x128xf32>, vector<32x128xf32> -> vector<32x128xf32>
    %cst_15 = arith.constant dense<0.000000e+00> : vector<32x128xf32>
    %41 = tpu.matmul %39, %33, %cst_15 {dimension_numbers = #tpu.dot_dimension_numbers<[1], [0], [0], [1], [0, 0, 1, 1], [], []>} : vector<32x32xf32>, vector<32x128xf32>, vector<32x128xf32> -> vector<32x128xf32>
    %42 = arith.addf %40, %41 : vector<32x128xf32>
    %43 = vector.broadcast %36 : vector<1x128xf32> to vector<32x128xf32>
    %44 = arith.addf %42, %43 : vector<32x128xf32>
    %45 = vector.extract_strided_slice %44 {offsets = [0, 0], sizes = [32, 32], strides = [1, 1]} : vector<32x128xf32> to vector<32x32xf32>
    %46 = math.tanh %45 : vector<32x32xf32>
    %47 = vector.extract_strided_slice %44 {offsets = [0, 32], sizes = [32, 32], strides = [1, 1]} : vector<32x128xf32> to vector<32x32xf32>
    %48 = arith.negf %47 : vector<32x32xf32>
    %49 = math.exp %48 : vector<32x32xf32>
    %cst_16 = arith.constant 1.000000e+00 : f32
    %50 = vector.broadcast %cst_16 : f32 to vector<32x32xf32>
    %51 = arith.addf %50, %49 : vector<32x32xf32>
    %52 = arith.divf %50, %51 : vector<32x32xf32>
    %53 = arith.mulf %46, %52 : vector<32x32xf32>
    %cst_17 = arith.constant dense<0.000000e+00> : vector<32x128xf32>
    %54 = tpu.matmul %53, %35, %cst_17 {dimension_numbers = #tpu.dot_dimension_numbers<[1], [0], [0], [1], [0, 0, 1, 1], [], []>} : vector<32x32xf32>, vector<32x128xf32>, vector<32x128xf32> -> vector<32x128xf32>
    %55 = vector.broadcast %37 : vector<1x128xf32> to vector<32x128xf32>
    %56 = arith.addf %54, %55 : vector<32x128xf32>
    %57 = vector.extract_strided_slice %56 {offsets = [0, 0], sizes = [32, 32], strides = [1, 1]} : vector<32x128xf32> to vector<32x32xf32>
    %58 = arith.addf %57, %2 : vector<32x32xf32>
    %59 = arith.addf %32, %56 : vector<32x128xf32>
    %c112 = arith.constant 112 : index
    %c0_18 = arith.constant 0 : index
    %60 = vector.load %arg1[%c112, %c0_18] : memref<472x128xf32, #tpu.memory_space<vmem>>, vector<32x128xf32>
    %c144 = arith.constant 144 : index
    %c0_19 = arith.constant 0 : index
    %61 = vector.load %arg1[%c144, %c0_19] : memref<472x128xf32, #tpu.memory_space<vmem>>, vector<32x128xf32>
    %c176 = arith.constant 176 : index
    %c0_20 = arith.constant 0 : index
    %62 = vector.load %arg1[%c176, %c0_20] : memref<472x128xf32, #tpu.memory_space<vmem>>, vector<32x128xf32>
    %c208 = arith.constant 208 : index
    %c0_21 = arith.constant 0 : index
    %63 = vector.load %arg1[%c208, %c0_21] : memref<472x128xf32, #tpu.memory_space<vmem>>, vector<1x128xf32>
    %c209 = arith.constant 209 : index
    %c0_22 = arith.constant 0 : index
    %64 = vector.load %arg1[%c209, %c0_22] : memref<472x128xf32, #tpu.memory_space<vmem>>, vector<1x128xf32>
    %c2_i32_23 = arith.constant 2 : i32
    %65 = tpu.dynamic_rotate %58 by %c2_i32_23 dim 0 : vector<32x32xf32>, i32 -> vector<32x32xf32>
    %66 = arith.mulf %65, %27 : vector<32x32xf32>
    %cst_24 = arith.constant dense<0.000000e+00> : vector<32x128xf32>
    %67 = tpu.matmul %58, %61, %cst_24 {dimension_numbers = #tpu.dot_dimension_numbers<[1], [0], [0], [1], [0, 0, 1, 1], [], []>} : vector<32x32xf32>, vector<32x128xf32>, vector<32x128xf32> -> vector<32x128xf32>
    %cst_25 = arith.constant dense<0.000000e+00> : vector<32x128xf32>
    %68 = tpu.matmul %66, %60, %cst_25 {dimension_numbers = #tpu.dot_dimension_numbers<[1], [0], [0], [1], [0, 0, 1, 1], [], []>} : vector<32x32xf32>, vector<32x128xf32>, vector<32x128xf32> -> vector<32x128xf32>
    %69 = arith.addf %67, %68 : vector<32x128xf32>
    %70 = vector.broadcast %63 : vector<1x128xf32> to vector<32x128xf32>
    %71 = arith.addf %69, %70 : vector<32x128xf32>
    %72 = vector.extract_strided_slice %71 {offsets = [0, 0], sizes = [32, 32], strides = [1, 1]} : vector<32x128xf32> to vector<32x32xf32>
    %73 = math.tanh %72 : vector<32x32xf32>
    %74 = vector.extract_strided_slice %71 {offsets = [0, 32], sizes = [32, 32], strides = [1, 1]} : vector<32x128xf32> to vector<32x32xf32>
    %75 = arith.negf %74 : vector<32x32xf32>
    %76 = math.exp %75 : vector<32x32xf32>
    %cst_26 = arith.constant 1.000000e+00 : f32
    %77 = vector.broadcast %cst_26 : f32 to vector<32x32xf32>
    %78 = arith.addf %77, %76 : vector<32x32xf32>
    %79 = arith.divf %77, %78 : vector<32x32xf32>
    %80 = arith.mulf %73, %79 : vector<32x32xf32>
    %cst_27 = arith.constant dense<0.000000e+00> : vector<32x128xf32>
    %81 = tpu.matmul %80, %62, %cst_27 {dimension_numbers = #tpu.dot_dimension_numbers<[1], [0], [0], [1], [0, 0, 1, 1], [], []>} : vector<32x32xf32>, vector<32x128xf32>, vector<32x128xf32> -> vector<32x128xf32>
    %82 = vector.broadcast %64 : vector<1x128xf32> to vector<32x128xf32>
    %83 = arith.addf %81, %82 : vector<32x128xf32>
    %84 = vector.extract_strided_slice %83 {offsets = [0, 0], sizes = [32, 32], strides = [1, 1]} : vector<32x128xf32> to vector<32x32xf32>
    %85 = arith.addf %84, %58 : vector<32x32xf32>
    %86 = arith.addf %59, %83 : vector<32x128xf32>
    %c216 = arith.constant 216 : index
    %c0_28 = arith.constant 0 : index
    %87 = vector.load %arg1[%c216, %c0_28] : memref<472x128xf32, #tpu.memory_space<vmem>>, vector<32x128xf32>
    %c248 = arith.constant 248 : index
    %c0_29 = arith.constant 0 : index
    %88 = vector.load %arg1[%c248, %c0_29] : memref<472x128xf32, #tpu.memory_space<vmem>>, vector<32x128xf32>
    %c280 = arith.constant 280 : index
    %c0_30 = arith.constant 0 : index
    %89 = vector.load %arg1[%c280, %c0_30] : memref<472x128xf32, #tpu.memory_space<vmem>>, vector<32x128xf32>
    %c312 = arith.constant 312 : index
    %c0_31 = arith.constant 0 : index
    %90 = vector.load %arg1[%c312, %c0_31] : memref<472x128xf32, #tpu.memory_space<vmem>>, vector<1x128xf32>
    %c313 = arith.constant 313 : index
    %c0_32 = arith.constant 0 : index
    %91 = vector.load %arg1[%c313, %c0_32] : memref<472x128xf32, #tpu.memory_space<vmem>>, vector<1x128xf32>
    %c4_i32_33 = arith.constant 4 : i32
    %92 = tpu.dynamic_rotate %85 by %c4_i32_33 dim 0 : vector<32x32xf32>, i32 -> vector<32x32xf32>
    %93 = arith.mulf %92, %31 : vector<32x32xf32>
    %cst_34 = arith.constant dense<0.000000e+00> : vector<32x128xf32>
    %94 = tpu.matmul %85, %88, %cst_34 {dimension_numbers = #tpu.dot_dimension_numbers<[1], [0], [0], [1], [0, 0, 1, 1], [], []>} : vector<32x32xf32>, vector<32x128xf32>, vector<32x128xf32> -> vector<32x128xf32>
    %cst_35 = arith.constant dense<0.000000e+00> : vector<32x128xf32>
    %95 = tpu.matmul %93, %87, %cst_35 {dimension_numbers = #tpu.dot_dimension_numbers<[1], [0], [0], [1], [0, 0, 1, 1], [], []>} : vector<32x32xf32>, vector<32x128xf32>, vector<32x128xf32> -> vector<32x128xf32>
    %96 = arith.addf %94, %95 : vector<32x128xf32>
    %97 = vector.broadcast %90 : vector<1x128xf32> to vector<32x128xf32>
    %98 = arith.addf %96, %97 : vector<32x128xf32>
    %99 = vector.extract_strided_slice %98 {offsets = [0, 0], sizes = [32, 32], strides = [1, 1]} : vector<32x128xf32> to vector<32x32xf32>
    %100 = math.tanh %99 : vector<32x32xf32>
    %101 = vector.extract_strided_slice %98 {offsets = [0, 32], sizes = [32, 32], strides = [1, 1]} : vector<32x128xf32> to vector<32x32xf32>
    %102 = arith.negf %101 : vector<32x32xf32>
    %103 = math.exp %102 : vector<32x32xf32>
    %cst_36 = arith.constant 1.000000e+00 : f32
    %104 = vector.broadcast %cst_36 : f32 to vector<32x32xf32>
    %105 = arith.addf %104, %103 : vector<32x32xf32>
    %106 = arith.divf %104, %105 : vector<32x32xf32>
    %107 = arith.mulf %100, %106 : vector<32x32xf32>
    %cst_37 = arith.constant dense<0.000000e+00> : vector<32x128xf32>
    %108 = tpu.matmul %107, %89, %cst_37 {dimension_numbers = #tpu.dot_dimension_numbers<[1], [0], [0], [1], [0, 0, 1, 1], [], []>} : vector<32x32xf32>, vector<32x128xf32>, vector<32x128xf32> -> vector<32x128xf32>
    %109 = vector.broadcast %91 : vector<1x128xf32> to vector<32x128xf32>
    %110 = arith.addf %108, %109 : vector<32x128xf32>
    %111 = vector.extract_strided_slice %110 {offsets = [0, 0], sizes = [32, 32], strides = [1, 1]} : vector<32x128xf32> to vector<32x32xf32>
    %112 = arith.addf %111, %85 : vector<32x32xf32>
    %113 = arith.addf %86, %110 : vector<32x128xf32>
    %c320 = arith.constant 320 : index
    %c0_38 = arith.constant 0 : index
    %114 = vector.load %arg1[%c320, %c0_38] : memref<472x128xf32, #tpu.memory_space<vmem>>, vector<32x128xf32>
    %c352 = arith.constant 352 : index
    %c0_39 = arith.constant 0 : index
    %115 = vector.load %arg1[%c352, %c0_39] : memref<472x128xf32, #tpu.memory_space<vmem>>, vector<32x128xf32>
    %c384 = arith.constant 384 : index
    %c0_40 = arith.constant 0 : index
    %116 = vector.load %arg1[%c384, %c0_40] : memref<472x128xf32, #tpu.memory_space<vmem>>, vector<32x128xf32>
    %c416 = arith.constant 416 : index
    %c0_41 = arith.constant 0 : index
    %117 = vector.load %arg1[%c416, %c0_41] : memref<472x128xf32, #tpu.memory_space<vmem>>, vector<1x128xf32>
    %c417 = arith.constant 417 : index
    %c0_42 = arith.constant 0 : index
    %118 = vector.load %arg1[%c417, %c0_42] : memref<472x128xf32, #tpu.memory_space<vmem>>, vector<1x128xf32>
    %c1_i32_43 = arith.constant 1 : i32
    %119 = tpu.dynamic_rotate %112 by %c1_i32_43 dim 0 : vector<32x32xf32>, i32 -> vector<32x32xf32>
    %120 = arith.mulf %119, %23 : vector<32x32xf32>
    %cst_44 = arith.constant dense<0.000000e+00> : vector<32x128xf32>
    %121 = tpu.matmul %112, %115, %cst_44 {dimension_numbers = #tpu.dot_dimension_numbers<[1], [0], [0], [1], [0, 0, 1, 1], [], []>} : vector<32x32xf32>, vector<32x128xf32>, vector<32x128xf32> -> vector<32x128xf32>
    %cst_45 = arith.constant dense<0.000000e+00> : vector<32x128xf32>
    %122 = tpu.matmul %120, %114, %cst_45 {dimension_numbers = #tpu.dot_dimension_numbers<[1], [0], [0], [1], [0, 0, 1, 1], [], []>} : vector<32x32xf32>, vector<32x128xf32>, vector<32x128xf32> -> vector<32x128xf32>
    %123 = arith.addf %121, %122 : vector<32x128xf32>
    %124 = vector.broadcast %117 : vector<1x128xf32> to vector<32x128xf32>
    %125 = arith.addf %123, %124 : vector<32x128xf32>
    %126 = vector.extract_strided_slice %125 {offsets = [0, 0], sizes = [32, 32], strides = [1, 1]} : vector<32x128xf32> to vector<32x32xf32>
    %127 = math.tanh %126 : vector<32x32xf32>
    %128 = vector.extract_strided_slice %125 {offsets = [0, 32], sizes = [32, 32], strides = [1, 1]} : vector<32x128xf32> to vector<32x32xf32>
    %129 = arith.negf %128 : vector<32x32xf32>
    %130 = math.exp %129 : vector<32x32xf32>
    %cst_46 = arith.constant 1.000000e+00 : f32
    %131 = vector.broadcast %cst_46 : f32 to vector<32x32xf32>
    %132 = arith.addf %131, %130 : vector<32x32xf32>
    %133 = arith.divf %131, %132 : vector<32x32xf32>
    %134 = arith.mulf %127, %133 : vector<32x32xf32>
    %cst_47 = arith.constant dense<0.000000e+00> : vector<32x128xf32>
    %135 = tpu.matmul %134, %116, %cst_47 {dimension_numbers = #tpu.dot_dimension_numbers<[1], [0], [0], [1], [0, 0, 1, 1], [], []>} : vector<32x32xf32>, vector<32x128xf32>, vector<32x128xf32> -> vector<32x128xf32>
    %136 = vector.broadcast %118 : vector<1x128xf32> to vector<32x128xf32>
    %137 = arith.addf %135, %136 : vector<32x128xf32>
    %138 = arith.addf %113, %137 : vector<32x128xf32>
    %c424 = arith.constant 424 : index
    %c0_48 = arith.constant 0 : index
    %139 = vector.load %arg1[%c424, %c0_48] : memref<472x128xf32, #tpu.memory_space<vmem>>, vector<32x128xf32>
    %c456 = arith.constant 456 : index
    %c0_49 = arith.constant 0 : index
    %140 = vector.load %arg1[%c456, %c0_49] : memref<472x128xf32, #tpu.memory_space<vmem>>, vector<1x128xf32>
    %c464 = arith.constant 464 : index
    %c0_50 = arith.constant 0 : index
    %141 = vector.load %arg1[%c464, %c0_50] : memref<472x128xf32, #tpu.memory_space<vmem>>, vector<8x32xf32>
    %cst_51 = arith.constant dense<0.000000e+00> : vector<8x128xf32>
    %142 = tpu.matmul %141, %138, %cst_51 {dimension_numbers = #tpu.dot_dimension_numbers<[1], [0], [0], [1], [0, 0, 1, 1], [], []>} : vector<8x32xf32>, vector<32x128xf32>, vector<8x128xf32> -> vector<8x128xf32>
    %143 = vector.extract_strided_slice %142 {offsets = [0, 32], sizes = [8, 32], strides = [1, 1]} : vector<8x128xf32> to vector<8x32xf32>
    %cst_52 = arith.constant dense<0.000000e+00> : vector<8x128xf32>
    %144 = tpu.matmul %143, %139, %cst_52 {dimension_numbers = #tpu.dot_dimension_numbers<[1], [0], [0], [1], [0, 0, 1, 1], [], []>} : vector<8x32xf32>, vector<32x128xf32>, vector<8x128xf32> -> vector<8x128xf32>
    %145 = vector.broadcast %140 : vector<1x128xf32> to vector<8x128xf32>
    %146 = arith.addf %144, %145 : vector<8x128xf32>
    %c0_53 = arith.constant 0 : index
    %c0_54 = arith.constant 0 : index
    %147 = vector.load %arg2[%c0_53, %c0_54] : memref<8x128xf32, #tpu.memory_space<vmem>>, vector<8x128xf32>
    tpu.vector_store %arg2[%c0_53, %c0_54], %146 {strides = array<i32>} : memref<8x128xf32, #tpu.memory_space<vmem>>, vector<8x128xf32>,
    return
  }
}

</mosaic_0001>

<bundles_post_ra>
// kernel: _lambda_.1
= control target key start
LH: loop header
LB: loop body
LE: loop exit
PB: predicated region body
PF: predicated region fallthrough
CT: control target
= control target key end

     0   :  { %vm16_vm0 = vcmask 64512   ;;  %v114_v14 = vlaneseq  ;;  %v2524_v27 = vmov 0.0   ;;  %vm230_vm4 = vcmask 261120   ;;  %s2525_s16 = smov 96   ;;  %s2967_s1 = inlined_call_operand.vmem [shape: f32[472,128], index: 1, kind: input, shape index: {}]   ;;  %s2968_s0 = inlined_call_operand.vmem [shape: f32[32,8], index: 0, kind: input, shape index: {}]   ;;  %s2969_s2 = inlined_call_operand.vmem [shape: f32[8,128], index: 2, kind: output, shape index: {}]  }
   0x1   :  { %v15_v0 = vld [vmem:[%s2967_s1] sm:$0xff]  ;;  %v12_v2 = vld [vmem:[%s2968_s0 + $0x8] sm:$0xff]  ;;  %v13_v3 = vld [vmem:[%s2968_s0 + $0x10] sm:$0xff]  ;;  %vm2527_vm11 = vmmov 0  }
   0x2   :  { %v11_v1 = vld [vmem:[%s2968_s0] sm:$0xff]  ;;  %2102 = vmatprep.subr.mxu0 %v15_v0  ;;  %v14_v4 = vld [vmem:[%s2968_s0 + $0x18] sm:$0xff]  ;;  %v203_v5 = vld [vmem:[%s2967_s1 + $0x8] sm:$0xff]  ;;  %v2576_v15 = vshrl.u32 %v114_v14, 7 }
   0x3   :  { %2104 = vmatprep.mubr.msk.f32.mxu0 %vm16_vm0, %v11_v1  ;;  %2103 = vmatpush3.msra.mxu0 %v15_v0  ;;  %v204_v6 = vld [vmem:[%s2967_s1 + $0x10] sm:$0xff]  ;;  %v205_v8 = vld [vmem:[%s2967_s1 + $0x18] sm:$0xff]  ;;  %v206_v9 = vld [vmem:[%s2967_s1 + $0x20] sm:$0xff] }
   0x4   :  { %2105 = vmatmul.mubr.msk.f32.vlgmr.msra.gmra.mrb[0].mxu0 %vm16_vm0, %v12_v2  ;;  %v2300_v7 = vpack.c.bf16 %v204_v6, %v203_v5  ;;  %v2304_v10 = vpack.c.bf16 %v206_v9, %v205_v8  ;;  %v207_v11 = vld [vmem:[%s2967_s1 + $0x28] sm:$0xff]  ;;  %v208_v12 = vld [vmem:[%s2967_s1 + $0x30] sm:$0xff]  ;;  %v117_v16 = vadd.s32 16, %v2576_v15  ;;  %v2580_v17 = vand.u32 15, %v2576_v15  ;;  %v209_v31 = vld [vmem:[%s2967_s1 + $0x38] sm:$0xff] }
   0x5   :  { %2107 = vmatprep.mubr.msk.f32.mxu0 %vm16_vm0, %v13_v3  ;;  %v2308_v13 = vpack.c.bf16 %v208_v12, %v207_v11  ;;  %vm221_vm1 = vcmp.lt.s32.totalorder %v2576_v15, 1  ;;  %v210_v32 = vld [vmem:[%s2967_s1 + $0x40] sm:$0xff]  ;;  %v211_v39 = vld [vmem:[%s2967_s1 + $0x48] sm:$0xff]  ;;  %v212_v40 = vld [vmem:[%s2967_s1 + $0x50] sm:$0xff]  ;;  %vm608_vm7 = vcmp.lt.s32.totalorder %v2576_v15, 2  ;;  %vm994_vm10 = vcmp.lt.s32.totalorder %v2576_v15, 4 }
   0x6   :  { %2301 = vmatprep.subr.bf16.mxu1 %v2300_v7  ;;  %v2582_v18 = vand.u32 15, %v117_v16  ;;  %vm167_vm2 = vcmp.ge.s32.totalorder %v2580_v17, 1  ;;  %v2312_v38 = vpack.c.bf16 %v210_v32, %v209_v31  ;;  %v2316_v41 = vpack.c.bf16 %v212_v40, %v211_v39  ;;  %v1924_v42 = vld [vmem:[%s2967_s1 + $0x68] ss:$0 sm:$0xff]  ;;  %v213_v57 = vld [vmem:[%s2967_s1 + $0x58] sm:$0xff]  ;;  %v214_v58 = vld [vmem:[%s2967_s1 + $0x60] sm:$0xff] }
   0x7   :  { %2303 = vmatpush3.bf16.msra.mxu1 %v2300_v7  ;;  %v2601_v28 = vsel %vm167_vm2, 1.0, %v2524_v27  ;;  %v2320_v60 = vpack.c.bf16 %v214_v58, %v213_v57  ;;  %v592_v31 = vld [vmem:[%s2967_s1 + $0x80] sm:$0xff]  ;;  %v593_v32 = vld [vmem:[%s2967_s1 + $0x88] sm:$0xff]  ;;  %vm179_vm5 = vcmp.ge.s32.totalorder %v2580_v17, 2  ;;  %vm191_vm8 = vcmp.ge.s32.totalorder %v2580_v17, 4 }
   0x8   :  { %2108 = vmatmul.mubr.msk.f32.gmra.mrb[2].mxu0 %vm16_vm0, %v14_v4  ;;  %2305 = vmatprep.subr.bf16.mxu1 %v2304_v10  ;;  %vm169_vm3 = vcmp.ge.s32.totalorder %v2582_v18, 1  ;;  %vm181_vm6 = vcmp.ge.s32.totalorder %v2582_v18, 2  ;;  %vm193_vm9 = vcmp.ge.s32.totalorder %v2582_v18, 4  ;;  %v982_v18 = vld [vmem:[%s2967_s1 + $0x108] sm:$0xff]  ;;  %v1370_v15 = vld [vmem:[%s2967_s1 + $0x180] sm:$0xff] }
   0x9   :  { %v2605_v30 = vsel %vm169_vm3, 1.0, %v2524_v27  ;;  %2317 = vmatprep.subr.bf16.mxu0 %v2316_v41 }
   0xa   :  { %2319 = vmatpush3.bf16.msra.mxu0 %v2316_v41 }
   0xb   :  { %2307 = vmatpush3.bf16.msra.mxu1 %v2304_v10  ;;  %2321 = vmatprep.subr.bf16.mxu0 %v2320_v60 }
   0xc   :  { %2309 = vmatprep.subr.bf16.mxu1 %v2308_v13 }
   0xe   :  { %2323 = vmatpush3.bf16.msra.mxu0 %v2320_v60 }
  0xd7   :  { %v2584_v19 = vpop.f32.mrb[0].mxu0 }
  0xd8   :  { %v218_v20 = vrot.slane %v2584_v19, 7  ;;  %v2587_v21 = vpop.f32.mrb[1].mxu0 }
  0xd9   :  { %v217_v22 = vrot.slane %v2587_v21, 7 }
  0xdb   :  { %v2593_v23 = vpop.f32.mrb[2].mxu0  ;;  %v224_v24 = vsel %vm221_vm1, %v217_v22, %v218_v20 }
  0xdc   :  { %v220_v25 = vrot.slane %v2593_v23, 7  ;;  %v2598_v26 = vpop.f32.mrb[3].mxu0 }
  0xdd   :  { %v219_v29 = vrot.slane %v2598_v26, 7 }
  0xde   :  { %v225_v33 = vsel %vm221_vm1, %v220_v25, %v217_v22 }
  0xdf   :  { %v223_v34 = vsel %vm221_vm1, %v218_v20, %v219_v29  ;;  %v226_v35 = vmul.f32 %v2601_v28, %v225_v33  ;;  %v222_v36 = vsel %vm221_vm1, %v219_v29, %v220_v25  ;;  %v591_v25 = vld [vmem:[%s2967_s1 + $0x78] sm:$0xff]  ;;  %v2328_v33 = vpack.c.bf16 %v593_v32, %v592_v31 }
  0xe0   :  { %v228_v37 = vmul.f32 %v2605_v30, %v223_v34  ;;  %v594_v34 = vld [vmem:[%s2967_s1 + $0x90] sm:$0xff] }
  0xe1   :  { %2118 = vmatprep.mubr.msk.f32.mxu1 %vm230_vm4, %v226_v35  ;;  %v595_v35 = vld [vmem:[%s2967_s1 + $0x98] sm:$0xff] }
  0xe2   :  { %2119 = vmatmul.mubr.msk.f32.vlgmr.msra.gmra.mrb[0].mxu1 %vm230_vm4, %v224_v24  ;;  %v590_v24 = vld [vmem:[%s2967_s1 + $0x70] sm:$0xff] }
  0xe3   :  { %2121 = vmatprep.mubr.msk.f32.mxu1 %vm230_vm4, %v228_v37  ;;  %2311 = vmatpush3.bf16.msra.mxu1 %v2308_v13  ;;  %v2324_v29 = vpack.c.bf16 %v591_v25, %v590_v24  ;;  %v1929_v37 = vld [vmem:[%s2967_s1 + $0x69] ss:$0 sm:$0xff] }
  0xe4   :  { %2313 = vmatprep.subr.bf16.mxu1 %v2312_v38 }
  0xe5   :  { %2325 = vmatprep.subr.bf16.mxu0 %v2324_v29 }
  0xe6   :  { %2122 = vmatmul.mubr.msk.f32.gmra.mrb[2].mxu1 %vm230_vm4, %v222_v36  ;;  %v2332_v36 = vpack.c.bf16 %v595_v35, %v594_v34 }
  0xe7   :  { %2315 = vmatpush3.bf16.msra.mxu1 %v2312_v38  ;;  %2132 = vmatprep.mubr.msk.f32.mxu1 %vm230_vm4, %v2587_v21 }
  0xea   :  { %2133 = vmatmul.mubr.msk.f32.vlgmr.msra.gmra.mrb[0].mxu1 %vm230_vm4, %v2584_v19 }
  0xeb   :  { %2135 = vmatprep.mubr.msk.f32.mxu1 %vm230_vm4, %v2598_v26 }
  0xee   :  { %2136 = vmatmul.mubr.msk.f32.gmra.mrb[2].mxu1 %vm230_vm4, %v2593_v23 }
 0x1bd   :  { %v2134_v43 = vpop.f32.mrb[0].mxu1 }
 0x1be   :  { %v430_v44 = vadd.f32 %v2134_v43, %v1924_v42  ;;  %v406_v45 = vpop.f32.mrb[1].mxu1 }
 0x1bf   :  { %v429_v46 = vadd.f32 %v1924_v42, %v406_v45 }
 0x1c0   :  { %v1926_v47 = vmul.f32 -1.442695, %v430_v44 }
 0x1c1   :  { %v1925_v48 = vmul.f32 -1.442695, %v429_v46  ;;  %v2137_v49 = vpop.f32.mrb[2].mxu1 }
 0x1c2   :  { %2428 = vpow2.f32 %v1926_v47  ;;  %v432_v50 = vadd.f32 %v2137_v49, %v1924_v42  ;;  %v416_v51 = vpop.f32.mrb[3].mxu1 }
 0x1c3   :  { %2430 = vpow2.f32 %v1925_v48  ;;  %v431_v52 = vadd.f32 %v1924_v42, %v416_v51 }
 0x1c4   :  { %v1928_v53 = vmul.f32 -1.442695, %v432_v50 }
 0x1c5   :  { %v1927_v54 = vmul.f32 -1.442695, %v431_v52 }
 0x1c6   :  { %2432 = vpow2.f32 %v1928_v53  ;;  %v596_v53 = vld [vmem:[%s2967_s1 + $0xa0] sm:$0xff] }
 0x1c7   :  { %2434 = vpow2.f32 %v1927_v54 }
 0x1cc   :  { %v2429_v55 = vpop.eup %2428 }
 0x1cd   :  { %v2431_v56 = vpop.eup %2430  ;;  %v450_v61 = vadd.f32 1.0, %v2429_v55 }
 0x1ce   :  { %v449_v59 = vadd.f32 1.0, %v2431_v56 }
 0x1d0   :  { %v2433_v62 = vpop.eup %2432  ;;  %2436 = vrcp.f32 %v449_v59 }
 0x1d1   :  { %v2435_v63 = vpop.eup %2434  ;;  %2438 = vrcp.f32 %v450_v61  ;;  %v452_v1 = vadd.f32 1.0, %v2433_v62  ;;  %v598_v61 = vld [vmem:[%s2967_s1 + $0xb0] sm:$0xff]  ;;  %v599_v62 = vld [vmem:[%s2967_s1 + $0xb8] sm:$0xff] }
 0x1d2   :  { %v451_v0 = vadd.f32 1.0, %v2435_v63  ;;  %v2340_v63 = vpack.c.bf16 %v599_v62, %v598_v61  ;;  %v981_v61 = vld [vmem:[%s2967_s1 + $0x100] sm:$0xff] }
 0x1d4   :  { %2440 = vrcp.f32 %v451_v0  ;;  %2341 = vmatprep.subr.bf16.mxu1 %v2340_v63  ;;  %v1942_v0 = vld [vmem:[%s2967_s1 + $0xd0] ss:$0 sm:$0xff] }
 0x1d5   :  { %2442 = vrcp.f32 %v452_v1  ;;  %2343 = vmatpush3.bf16.msra.mxu1 %v2340_v63  ;;  %v1947_v63 = vld [vmem:[%s2967_s1 + $0xd1] ss:$0 sm:$0xff] }
 0x1d6   :  { %2444 = vtanh.f32 %v429_v46 }
 0x1d7   :  { %2446 = vtanh.f32 %v430_v44 }
 0x1d8   :  { %2448 = vtanh.f32 %v431_v52 }
 0x1d9   :  { %2450 = vtanh.f32 %v432_v50 }
 0x1da   :  { %v2437_v2 = vpop.eup %2436 }
 0x1db   :  { %465 = vrot.lane.b32.xlu0 %v2437_v2, %s2525_s16  ;;  %v2439_v3 = vpop.eup %2438 }
 0x1de   :  { %v2441_v4 = vpop.eup %2440 }
 0x1df   :  { %467 = vrot.lane.b32.xlu0 %v2439_v3, %s2525_s16  ;;  %469 = vrot.lane.b32.xlu1 %v2441_v4, %s2525_s16  ;;  %v2443_v5 = vpop.eup %2442 }
 0x1e0   :  { %v2445_v6 = vpop.eup %2444 }
 0x1e1   :  { %v2447_v9 = vpop.eup %2446 }
 0x1e2   :  { %v2449_v10 = vpop.eup %2448 }
 0x1e3   :  { %471 = vrot.lane.b32.xlu1 %v2443_v5, %s2525_s16  ;;  %v2451_v16 = vpop.eup %2450 }
 0x24d   :  { %v466_v7 = vpop.permute.xlu0 %465 }
 0x24e   :  { %v477_v8 = vmul.f32 %v2445_v6, %v466_v7 }
 0x250   :  { %2146 = vmatprep.mubr.msk.f32.mxu0 %vm230_vm4, %v477_v8 }
 0x251   :  { %v468_v11 = vpop.permute.xlu0 %467  ;;  %v470_v12 = vpop.permute.xlu1 %469 }
 0x252   :  { %v478_v13 = vmul.f32 %v2447_v9, %v468_v11  ;;  %v479_v14 = vmul.f32 %v2449_v10, %v470_v12 }
 0x254   :  { %2147 = vmatmul.mubr.msk.f32.vlgmr.msra.gmra.mrb[4].mxu0 %vm230_vm4, %v478_v13  ;;  %v600_v13 = vld [vmem:[%s2967_s1 + $0xc0] sm:$0xff] }
 0x255   :  { %v472_v20 = vpop.permute.xlu1 %471  ;;  %2149 = vmatprep.mubr.msk.f32.mxu0 %vm230_vm4, %v479_v14  ;;  %2327 = vmatpush3.bf16.msra.mxu0 %v2324_v29  ;;  %v601_v14 = vld [vmem:[%s2967_s1 + $0xc8] sm:$0xff] }
 0x256   :  { %v480_v22 = vmul.f32 %v2451_v16, %v472_v20  ;;  %2329 = vmatprep.subr.bf16.mxu0 %v2328_v33  ;;  %v2344_v16 = vpack.c.bf16 %v601_v14, %v600_v13 }
 0x258   :  { %2150 = vmatmul.mubr.msk.f32.gmra.mrb[6].mxu0 %vm230_vm4, %v480_v22  ;;  %2345 = vmatprep.subr.bf16.mxu1 %v2344_v16 }
 0x259   :  { %2331 = vmatpush3.bf16.msra.mxu0 %v2328_v33  ;;  %2347 = vmatpush3.bf16.msra.mxu1 %v2344_v16 }
 0x25a   :  { %2333 = vmatprep.subr.bf16.mxu0 %v2332_v36 }
 0x327   :  { %v2148_v38 = vpop.f32.mrb[4].mxu0 }
 0x328   :  { %v563_v39 = vpop.f32.mrb[5].mxu0  ;;  %v2677_v40 = vadd.f32 %v2148_v38, %v1929_v37 }
 0x329   :  { %v2679_v41 = vadd.f32 %v1929_v37, %v563_v39 }
 0x32a   :  { %v2689_v46 = vadd.f32 %v2584_v19, %v2677_v40  ;;  %v1912_v19 = vsel %vm179_vm5, 1.0, %v2524_v27 }
 0x32b   :  { %v2151_v42 = vpop.f32.mrb[6].mxu0  ;;  %v2683_v43 = vadd.f32 %v2679_v41, %v2587_v21 }
 0x32c   :  { %v2685_v44 = vadd.f32 %v2151_v42, %v1929_v37  ;;  %v573_v45 = vpop.f32.mrb[7].mxu0  ;;  %v605_v51 = vrot.slane %v2689_v46, 6 }
 0x32d   :  { %v2691_v47 = vadd.f32 %v1929_v37, %v573_v45  ;;  %v604_v49 = vrot.slane %v2683_v43, 6 }
 0x32e   :  { %v2696_v48 = vadd.f32 %v2593_v23, %v2685_v44  ;;  %v1913_v23 = vsel %vm181_vm6, 1.0, %v2524_v27 }
 0x32f   :  { %v2701_v21 = vadd.f32 %v2691_v47, %v2598_v26  ;;  %v597_v26 = vld [vmem:[%s2967_s1 + $0xa8] sm:$0xff]  ;;  %v611_v59 = vsel %vm608_vm7, %v604_v49, %v605_v51 }
 0x330   :  { %v607_v50 = vrot.slane %v2696_v48, 6  ;;  %v2336_v58 = vpack.c.bf16 %v597_v26, %v596_v53 }
 0x331   :  { %v606_v52 = vrot.slane %v2701_v21, 6 }
 0x332   :  { %v612_v54 = vsel %vm608_vm7, %v607_v50, %v604_v49 }
 0x333   :  { %v613_v55 = vmul.f32 %v1912_v19, %v612_v54  ;;  %v610_v56 = vsel %vm608_vm7, %v605_v51, %v606_v52  ;;  %v609_v60 = vsel %vm608_vm7, %v606_v52, %v607_v50  ;;  %v976_v54 = vld [vmem:[%s2967_s1 + $0xd8] sm:$0xff] }
 0x334   :  { %v615_v57 = vmul.f32 %v1913_v23, %v610_v56 }
 0x335   :  { %2160 = vmatprep.mubr.msk.f32.mxu0 %vm230_vm4, %v613_v55  ;;  %v977_v55 = vld [vmem:[%s2967_s1 + $0xe0] sm:$0xff] }
 0x336   :  { %2161 = vmatmul.mubr.msk.f32.vlgmr.msra.gmra.mrb[8].mxu0 %vm230_vm4, %v611_v59  ;;  %v2348_v56 = vpack.c.bf16 %v977_v55, %v976_v54 }
 0x337   :  { %2163 = vmatprep.mubr.msk.f32.mxu0 %vm230_vm4, %v615_v57  ;;  %2335 = vmatpush3.bf16.msra.mxu0 %v2332_v36  ;;  %v978_v57 = vld [vmem:[%s2967_s1 + $0xe8] sm:$0xff] }
 0x338   :  { %2337 = vmatprep.subr.bf16.mxu0 %v2336_v58  ;;  %2349 = vmatprep.subr.bf16.mxu1 %v2348_v56 }
 0x33a   :  { %2164 = vmatmul.mubr.msk.f32.gmra.mrb[10].mxu0 %vm230_vm4, %v609_v60  ;;  %v980_v60 = vld [vmem:[%s2967_s1 + $0xf8] sm:$0xff] }
 0x33b   :  { %2339 = vmatpush3.bf16.msra.mxu0 %v2336_v58  ;;  %2174 = vmatprep.mubr.msk.f32.mxu0 %vm230_vm4, %v2683_v43  ;;  %v979_v58 = vld [vmem:[%s2967_s1 + $0xf0] sm:$0xff]  ;;  %v2356_v62 = vpack.c.bf16 %v981_v61, %v980_v60 }
 0x33c   :  { %v2352_v59 = vpack.c.bf16 %v979_v58, %v978_v57 }
 0x33e   :  { %2175 = vmatmul.mubr.msk.f32.vlgmr.msra.gmra.mrb[8].mxu0 %vm230_vm4, %v2689_v46 }
 0x33f   :  { %2177 = vmatprep.mubr.msk.f32.mxu0 %vm230_vm4, %v2701_v21 }
 0x342   :  { %2178 = vmatmul.mubr.msk.f32.gmra.mrb[10].mxu0 %vm230_vm4, %v2696_v48 }
 0x411   :  { %v2176_v1 = vpop.f32.mrb[8].mxu0 }
 0x412   :  { %v816_v2 = vadd.f32 %v2176_v1, %v1942_v0  ;;  %v792_v3 = vpop.f32.mrb[9].mxu0 }
 0x413   :  { %v815_v4 = vadd.f32 %v1942_v0, %v792_v3 }
 0x414   :  { %v1944_v5 = vmul.f32 -1.442695, %v816_v2 }
 0x415   :  { %v1943_v6 = vmul.f32 -1.442695, %v815_v4  ;;  %v2179_v7 = vpop.f32.mrb[10].mxu0 }
 0x416   :  { %2452 = vpow2.f32 %v1944_v5  ;;  %v818_v8 = vadd.f32 %v2179_v7, %v1942_v0  ;;  %v802_v9 = vpop.f32.mrb[11].mxu0 }
 0x417   :  { %2454 = vpow2.f32 %v1943_v6  ;;  %v817_v10 = vadd.f32 %v1942_v0, %v802_v9 }
 0x418   :  { %v1946_v11 = vmul.f32 -1.442695, %v818_v8 }
 0x419   :  { %v1945_v12 = vmul.f32 -1.442695, %v817_v10 }
 0x41a   :  { %2456 = vpow2.f32 %v1946_v11 }
 0x41b   :  { %2458 = vpow2.f32 %v1945_v12 }
 0x420   :  { %v2453_v20 = vpop.eup %2452 }
 0x421   :  { %v2455_v22 = vpop.eup %2454  ;;  %v836_v24 = vadd.f32 1.0, %v2453_v20 }
 0x422   :  { %v835_v25 = vadd.f32 1.0, %v2455_v22 }
 0x423   :  { %2460 = vrcp.f32 %v836_v24 }
 0x424   :  { %v2457_v29 = vpop.eup %2456  ;;  %2462 = vrcp.f32 %v835_v25 }
 0x425   :  { %v2459_v31 = vpop.eup %2458  ;;  %v838_v32 = vadd.f32 1.0, %v2457_v29 }
 0x426   :  { %v837_v33 = vadd.f32 1.0, %v2459_v31  ;;  %v984_v31 = vld [vmem:[%s2967_s1 + $0x118] sm:$0xff] }
 0x427   :  { %2464 = vrcp.f32 %v838_v32  ;;  %v985_v32 = vld [vmem:[%s2967_s1 + $0x120] sm:$0xff] }
 0x428   :  { %2466 = vrcp.f32 %v837_v33  ;;  %v2364_v33 = vpack.c.bf16 %v985_v32, %v984_v31  ;;  %v1366_v32 = vld [vmem:[%s2967_s1 + $0x160] sm:$0xff] }
 0x429   :  { %2468 = vtanh.f32 %v815_v4 }
 0x42a   :  { %2470 = vtanh.f32 %v816_v2  ;;  %2365 = vmatprep.subr.bf16.mxu0 %v2364_v33 }
 0x42b   :  { %2472 = vtanh.f32 %v817_v10  ;;  %2367 = vmatpush3.bf16.msra.mxu0 %v2364_v33  ;;  %v1367_v33 = vld [vmem:[%s2967_s1 + $0x168] sm:$0xff] }
 0x42c   :  { %2474 = vtanh.f32 %v818_v8 }
 0x42d   :  { %v2461_v34 = vpop.eup %2460 }
 0x42e   :  { %v2463_v35 = vpop.eup %2462  ;;  %853 = vrot.lane.b32.xlu1 %v2461_v34, %s2525_s16  ;;  %v1960_v34 = vld [vmem:[%s2967_s1 + $0x138] ss:$0 sm:$0xff] }
 0x42f   :  { %851 = vrot.lane.b32.xlu0 %v2463_v35, %s2525_s16 }
 0x431   :  { %v2465_v36 = vpop.eup %2464 }
 0x432   :  { %v2467_v37 = vpop.eup %2466  ;;  %857 = vrot.lane.b32.xlu1 %v2465_v36, %s2525_s16 }
 0x433   :  { %855 = vrot.lane.b32.xlu0 %v2467_v37, %s2525_s16  ;;  %v2469_v39 = vpop.eup %2468 }
 0x434   :  { %v2471_v45 = vpop.eup %2470 }
 0x435   :  { %v2473_v51 = vpop.eup %2472 }
 0x436   :  { %v2475_v23 = vpop.eup %2474 }
 0x4a0   :  { %v854_v38 = vpop.permute.xlu1 %853 }
 0x4a1   :  { %v852_v42 = vpop.permute.xlu0 %851  ;;  %v864_v50 = vmul.f32 %v2471_v45, %v854_v38 }
 0x4a2   :  { %v863_v49 = vmul.f32 %v2469_v39, %v852_v42 }
 0x4a4   :  { %2188 = vmatprep.mubr.msk.f32.mxu1 %vm230_vm4, %v863_v49  ;;  %v858_v19 = vpop.permute.xlu1 %857 }
 0x4a5   :  { %2189 = vmatmul.mubr.msk.f32.vlgmr.msra.gmra.mrb[4].mxu1 %vm230_vm4, %v864_v50  ;;  %v856_v52 = vpop.permute.xlu0 %855  ;;  %v866_v26 = vmul.f32 %v2475_v23, %v858_v19  ;;  %v986_v23 = vld [vmem:[%s2967_s1 + $0x128] sm:$0xff] }
 0x4a6   :  { %v865_v53 = vmul.f32 %v2473_v51, %v856_v52  ;;  %2351 = vmatpush3.bf16.msra.mxu1 %v2348_v56 }
 0x4a7   :  { %2353 = vmatprep.subr.bf16.mxu1 %v2352_v59 }
 0x4a8   :  { %2191 = vmatprep.mubr.msk.f32.mxu1 %vm230_vm4, %v865_v53  ;;  %v987_v53 = vld [vmem:[%s2967_s1 + $0x130] sm:$0xff] }
 0x4a9   :  { %2192 = vmatmul.mubr.msk.f32.gmra.mrb[6].mxu1 %vm230_vm4, %v866_v26  ;;  %v2368_v26 = vpack.c.bf16 %v987_v53, %v986_v23 }
 0x4aa   :  { %2355 = vmatpush3.bf16.msra.mxu1 %v2352_v59 }
 0x4ab   :  { %2357 = vmatprep.subr.bf16.mxu1 %v2356_v62  ;;  %2369 = vmatprep.subr.bf16.mxu0 %v2368_v26 }
 0x4ac   :  { %2371 = vmatpush3.bf16.msra.mxu0 %v2368_v26 }
 0x578   :  { %v2190_v0 = vpop.f32.mrb[4].mxu1 }
 0x579   :  { %v949_v1 = vpop.f32.mrb[5].mxu1  ;;  %v2772_v2 = vadd.f32 %v2190_v0, %v1947_v63 }
 0x57a   :  { %v2774_v3 = vadd.f32 %v1947_v63, %v949_v1 }
 0x57b   :  { %v2784_v8 = vadd.f32 %v2772_v2, %v2689_v46  ;;  %v1914_v46 = vsel %vm191_vm8, 1.0, %v2524_v27 }
 0x57c   :  { %v2193_v4 = vpop.f32.mrb[6].mxu1  ;;  %v2778_v5 = vadd.f32 %v2774_v3, %v2683_v43 }
 0x57d   :  { %v2780_v6 = vadd.f32 %v2193_v4, %v1947_v63  ;;  %v959_v7 = vpop.f32.mrb[7].mxu1  ;;  %v991_v13 = vrot.slane %v2784_v8, 4 }
 0x57e   :  { %v2786_v9 = vadd.f32 %v1947_v63, %v959_v7  ;;  %v990_v11 = vrot.slane %v2778_v5, 4 }
 0x57f   :  { %v2791_v10 = vadd.f32 %v2780_v6, %v2696_v48  ;;  %v1915_v48 = vsel %vm193_vm9, 1.0, %v2524_v27  ;;  %v975_v23 = vadd.f32 %v2780_v6, %v2685_v44 }
 0x580   :  { %v2796_v43 = vadd.f32 %v2786_v9, %v2701_v21  ;;  %v983_v21 = vld [vmem:[%s2967_s1 + $0x110] sm:$0xff]  ;;  %v997_v25 = vsel %vm994_vm10, %v990_v11, %v991_v13  ;;  %v974_v26 = vadd.f32 %v2786_v9, %v2691_v47  ;;  %v1369_v47 = vld [vmem:[%s2967_s1 + $0x178] sm:$0xff] }
 0x581   :  { %v993_v12 = vrot.slane %v2791_v10, 4  ;;  %v2360_v24 = vpack.c.bf16 %v983_v21, %v982_v18 }
 0x582   :  { %v992_v17 = vrot.slane %v2796_v43, 4 }
 0x583   :  { %v998_v14 = vsel %vm994_vm10, %v993_v12, %v990_v11 }
 0x584   :  { %v999_v16 = vmul.f32 %v1914_v46, %v998_v14  ;;  %v996_v20 = vsel %vm994_vm10, %v991_v13, %v992_v17  ;;  %v995_v29 = vsel %vm994_vm10, %v992_v17, %v993_v12 }
 0x585   :  { %v1001_v22 = vmul.f32 %v1915_v48, %v996_v20  ;;  %v1362_v20 = vld [vmem:[%s2967_s1 + $0x140] sm:$0xff] }
 0x586   :  { %2202 = vmatprep.mubr.msk.f32.mxu1 %vm230_vm4, %v999_v16 }
 0x587   :  { %2203 = vmatmul.mubr.msk.f32.vlgmr.msra.gmra.mrb[8].mxu1 %vm230_vm4, %v997_v25  ;;  %v1364_v25 = vld [vmem:[%s2967_s1 + $0x150] sm:$0xff] }
 0x588   :  { %2205 = vmatprep.mubr.msk.f32.mxu1 %vm230_vm4, %v1001_v22  ;;  %2359 = vmatpush3.bf16.msra.mxu1 %v2356_v62  ;;  %v1363_v22 = vld [vmem:[%s2967_s1 + $0x148] sm:$0xff] }
 0x589   :  { %2361 = vmatprep.subr.bf16.mxu1 %v2360_v24 }
 0x58b   :  { %2206 = vmatmul.mubr.msk.f32.gmra.mrb[10].mxu1 %vm230_vm4, %v995_v29  ;;  %v1365_v29 = vld [vmem:[%s2967_s1 + $0x158] sm:$0xff] }
 0x58c   :  { %2363 = vmatpush3.bf16.msra.mxu1 %v2360_v24  ;;  %2216 = vmatprep.mubr.msk.f32.mxu1 %vm230_vm4, %v2778_v5  ;;  %v2372_v24 = vpack.c.bf16 %v1363_v22, %v1362_v20  ;;  %v2376_v31 = vpack.c.bf16 %v1365_v29, %v1364_v25 }
 0x58e   :  { %2373 = vmatprep.subr.bf16.mxu0 %v2372_v24 }
 0x58f   :  { %2217 = vmatmul.mubr.msk.f32.vlgmr.msra.gmra.mrb[8].mxu1 %vm230_vm4, %v2784_v8 }
 0x590   :  { %2219 = vmatprep.mubr.msk.f32.mxu1 %vm230_vm4, %v2796_v43 }
 0x593   :  { %2220 = vmatmul.mubr.msk.f32.gmra.mrb[10].mxu1 %vm230_vm4, %v2791_v10 }
 0x662   :  { %v2218_v35 = vpop.f32.mrb[8].mxu1 }
 0x663   :  { %v1202_v36 = vadd.f32 %v2218_v35, %v1960_v34  ;;  %v1178_v37 = vpop.f32.mrb[9].mxu1  ;;  %v1965_v35 = vld [vmem:[%s2967_s1 + $0x139] ss:$0 sm:$0xff] }
 0x664   :  { %v1201_v38 = vadd.f32 %v1960_v34, %v1178_v37  ;;  %v973_v37 = vadd.f32 %v2772_v2, %v2677_v40 }
 0x665   :  { %v1962_v39 = vmul.f32 -1.442695, %v1202_v36 }
 0x666   :  { %v1961_v42 = vmul.f32 -1.442695, %v1201_v38  ;;  %v2221_v45 = vpop.f32.mrb[10].mxu1 }
 0x667   :  { %2476 = vpow2.f32 %v1962_v39  ;;  %v1204_v49 = vadd.f32 %v2221_v45, %v1960_v34  ;;  %v1188_v50 = vpop.f32.mrb[11].mxu1 }
 0x668   :  { %2478 = vpow2.f32 %v1961_v42  ;;  %v1203_v19 = vadd.f32 %v1960_v34, %v1188_v50  ;;  %v2380_v34 = vpack.c.bf16 %v1367_v33, %v1366_v32  ;;  %v972_v42 = vadd.f32 %v2774_v3, %v2679_v41 }
 0x669   :  { %v1964_v51 = vmul.f32 -1.442695, %v1204_v49 }
 0x66a   :  { %v1963_v52 = vmul.f32 -1.442695, %v1203_v19 }
 0x66b   :  { %2480 = vpow2.f32 %v1964_v51 }
 0x66c   :  { %2482 = vpow2.f32 %v1963_v52 }
 0x671   :  { %v2477_v54 = vpop.eup %2476 }
 0x672   :  { %v2479_v55 = vpop.eup %2478  ;;  %v1222_v56 = vadd.f32 1.0, %v2477_v54 }
 0x673   :  { %v1221_v57 = vadd.f32 1.0, %v2479_v55 }
 0x674   :  { %2484 = vrcp.f32 %v1222_v56 }
 0x675   :  { %v2481_v58 = vpop.eup %2480  ;;  %2486 = vrcp.f32 %v1221_v57  ;;  %v1368_v57 = vld [vmem:[%s2967_s1 + $0x170] sm:$0xff] }
 0x676   :  { %v2483_v59 = vpop.eup %2482  ;;  %v1224_v60 = vadd.f32 1.0, %v2481_v58 }
 0x677   :  { %v1223_v61 = vadd.f32 1.0, %v2483_v59 }
 0x678   :  { %2488 = vrcp.f32 %v1224_v60  ;;  %v2384_v60 = vpack.c.bf16 %v1369_v47, %v1368_v57 }
 0x679   :  { %2490 = vrcp.f32 %v1223_v61  ;;  %v1978_v61 = vld [vmem:[%s2967_s1 + $0x1a0] ss:$0 sm:$0xff] }
 0x67a   :  { %2492 = vtanh.f32 %v1201_v38 }
 0x67b   :  { %2494 = vtanh.f32 %v1202_v36 }
 0x67c   :  { %2496 = vtanh.f32 %v1203_v19 }
 0x67d   :  { %2498 = vtanh.f32 %v1204_v49 }
 0x67e   :  { %v2485_v62 = vpop.eup %2484 }
 0x67f   :  { %v2487_v63 = vpop.eup %2486  ;;  %1239 = vrot.lane.b32.xlu1 %v2485_v62, %s2525_s16 }
 0x680   :  { %1237 = vrot.lane.b32.xlu0 %v2487_v63, %s2525_s16 }
 0x682   :  { %v2489_v0 = vpop.eup %2488 }
 0x683   :  { %v2491_v1 = vpop.eup %2490  ;;  %1243 = vrot.lane.b32.xlu1 %v2489_v0, %s2525_s16 }
 0x684   :  { %1241 = vrot.lane.b32.xlu0 %v2491_v1, %s2525_s16  ;;  %v2493_v7 = vpop.eup %2492 }
 0x685   :  { %v2495_v12 = vpop.eup %2494 }
 0x686   :  { %v2497_v48 = vpop.eup %2496 }
 0x687   :  { %v2499_v21 = vpop.eup %2498 }
 0x6f1   :  { %v1240_v4 = vpop.permute.xlu1 %1239 }
 0x6f2   :  { %v1238_v11 = vpop.permute.xlu0 %1237  ;;  %v1250_v13 = vmul.f32 %v2495_v12, %v1240_v4 }
 0x6f3   :  { %v1249_v46 = vmul.f32 %v2493_v7, %v1238_v11 }
 0x6f5   :  { %2230 = vmatprep.mubr.msk.f32.mxu0 %vm230_vm4, %v1249_v46  ;;  %v1244_v17 = vpop.permute.xlu1 %1243 }
 0x6f6   :  { %2231 = vmatmul.mubr.msk.f32.vlgmr.msra.gmra.mrb[12].mxu0 %vm230_vm4, %v1250_v13  ;;  %v1242_v18 = vpop.permute.xlu0 %1241  ;;  %v1252_v16 = vmul.f32 %v2499_v21, %v1244_v17  ;;  %v1373_v21 = vld [vmem:[%s2967_s1 + $0x198] sm:$0xff] }
 0x6f7   :  { %v1251_v14 = vmul.f32 %v2497_v48, %v1242_v18  ;;  %2375 = vmatpush3.bf16.msra.mxu0 %v2372_v24  ;;  %v1372_v18 = vld [vmem:[%s2967_s1 + $0x190] sm:$0xff] }
 0x6f8   :  { %2377 = vmatprep.subr.bf16.mxu0 %v2376_v31 }
 0x6f9   :  { %2233 = vmatprep.mubr.msk.f32.mxu0 %vm230_vm4, %v1251_v14  ;;  %v2392_v14 = vpack.c.bf16 %v1373_v21, %v1372_v18 }
 0x6fa   :  { %2234 = vmatmul.mubr.msk.f32.gmra.mrb[14].mxu0 %vm230_vm4, %v1252_v16 }
 0x6fb   :  { %2379 = vmatpush3.bf16.msra.mxu0 %v2376_v31 }
 0x6fc   :  { %2381 = vmatprep.subr.bf16.mxu0 %v2380_v34 }
 0x7c9   :  { %v2232_v36 = vpop.f32.mrb[12].mxu0 }
 0x7ca   :  { %v1341_v38 = vadd.f32 %v2232_v36, %v1965_v35  ;;  %v1335_v39 = vpop.f32.mrb[13].mxu0 }
 0x7cb   :  { %v1336_v45 = vadd.f32 %v1965_v35, %v1335_v39 }
 0x7cc   :  { %v1355_v49 = vadd.f32 %v1341_v38, %v2784_v8  ;;  %v2872_v50 = vadd.f32 %v1341_v38, %v973_v37 }
 0x7cd   :  { %v1354_v19 = vadd.f32 %v1336_v45, %v2778_v5  ;;  %v2875_v51 = vadd.f32 %v1336_v45, %v972_v42  ;;  %v2235_v52 = vpop.f32.mrb[14].mxu0 }
 0x7ce   :  { %v1377_v53 = vrot.slane %v1355_v49, 7  ;;  %v1351_v40 = vadd.f32 %v2235_v52, %v1965_v35  ;;  %v1345_v2 = vpop.f32.mrb[15].mxu0 }
 0x7cf   :  { %v1376_v41 = vrot.slane %v1354_v19, 7  ;;  %v1346_v3 = vadd.f32 %v1965_v35, %v1345_v2 }
 0x7d0   :  { %v1357_v8 = vadd.f32 %v1351_v40, %v2791_v10  ;;  %v2882_v54 = vadd.f32 %v1351_v40, %v975_v23 }
 0x7d1   :  { %v1356_v5 = vadd.f32 %v1346_v3, %v2796_v43  ;;  %v2885_v55 = vadd.f32 %v1346_v3, %v974_v26  ;;  %v1382_v56 = vsel %vm221_vm1, %v1376_v41, %v1377_v53  ;;  %v2526_v26 = vmov 0.0|0.0  }
 0x7d2   :  { %v1379_v44 = vrot.slane %v1357_v8, 7 }
 0x7d3   :  { %v1378_v6 = vrot.slane %v1356_v5, 7 }
 0x7d4   :  { %v1383_v9 = vsel %vm221_vm1, %v1379_v44, %v1376_v41  ;;  %v1983_v41 = vld [vmem:[%s2967_s1 + $0x1a1] ss:$0 sm:$0xff] }
 0x7d5   :  { %v1384_v10 = vmul.f32 %v2601_v28, %v1383_v9  ;;  %v1381_v43 = vsel %vm221_vm1, %v1377_v53, %v1378_v6  ;;  %v1380_v58 = vsel %vm221_vm1, %v1378_v6, %v1379_v44  ;;  %v1371_v28 = vld [vmem:[%s2967_s1 + $0x188] sm:$0xff] }
 0x7d6   :  { %v1386_v59 = vmul.f32 %v2605_v30, %v1381_v43  ;;  %v2388_v30 = vpack.c.bf16 %v1371_v28, %v1370_v15  ;;  %v1746_v15 = vld [vmem:[%s2967_s1 + $0x1c0] sm:$0xff] }
 0x7d7   :  { %2244 = vmatprep.mubr.msk.f32.mxu0 %vm230_vm4, %v1384_v10 }
 0x7d8   :  { %2245 = vmatmul.mubr.msk.f32.vlgmr.msra.gmra.mrb[16].mxu0 %vm230_vm4, %v1382_v56  ;;  %2389 = vmatprep.subr.bf16.mxu1 %v2388_v30 }
 0x7d9   :  { %2247 = vmatprep.mubr.msk.f32.mxu0 %vm230_vm4, %v1386_v59  ;;  %2383 = vmatpush3.bf16.msra.mxu0 %v2380_v34 }
 0x7da   :  { %2385 = vmatprep.subr.bf16.mxu0 %v2384_v60  ;;  %2391 = vmatpush3.bf16.msra.mxu1 %v2388_v30 }
 0x7db   :  { %2393 = vmatprep.subr.bf16.mxu1 %v2392_v14 }
 0x7dc   :  { %2248 = vmatmul.mubr.msk.f32.gmra.mrb[18].mxu0 %vm230_vm4, %v1380_v58 }
 0x7dd   :  { %2387 = vmatpush3.bf16.msra.mxu0 %v2384_v60  ;;  %2258 = vmatprep.mubr.msk.f32.mxu0 %vm230_vm4, %v1354_v19  ;;  %v1748_v60 = vld [vmem:[%s2967_s1 + $0x1d0] sm:$0xff] }
 0x7de   :  { %2395 = vmatpush3.bf16.msra.mxu1 %v2392_v14  ;;  %2402 = vmatprep.subr.bf16.mxu0 %v2526_v26 }
 0x7df   :  { %2396 = vmatprep.subr.bf16.mxu1 %v2526_v26 }
 0x7e0   :  { %2259 = vmatmul.mubr.msk.f32.vlgmr.msra.gmra.mrb[16].mxu0 %vm230_vm4, %v1355_v49 }
 0x7e1   :  { %2261 = vmatprep.mubr.msk.f32.mxu0 %vm230_vm4, %v1356_v5 }
 0x7e4   :  { %2262 = vmatmul.mubr.msk.f32.gmra.mrb[18].mxu0 %vm230_vm4, %v1357_v8 }
 0x7e5   :  { %2297 = vmatprep.mubr.msk.f32.mxu0 %vm2527_vm11, %v2524_v27 }
 0x8b3   :  { %v2260_v62 = vpop.f32.mrb[16].mxu0 }
 0x8b4   :  { %v1587_v63 = vadd.f32 %v2260_v62, %v1978_v61  ;;  %v1563_v0 = vpop.f32.mrb[17].mxu0 }
 0x8b5   :  { %v1586_v1 = vadd.f32 %v1978_v61, %v1563_v0 }
 0x8b6   :  { %v1980_v4 = vmul.f32 -1.442695, %v1587_v63 }
 0x8b7   :  { %v1979_v7 = vmul.f32 -1.442695, %v1586_v1  ;;  %v2263_v11 = vpop.f32.mrb[18].mxu0 }
 0x8b8   :  { %2500 = vpow2.f32 %v1980_v4  ;;  %v1589_v12 = vadd.f32 %v2263_v11, %v1978_v61  ;;  %v1573_v46 = vpop.f32.mrb[19].mxu0 }
 0x8b9   :  { %2502 = vpow2.f32 %v1979_v7  ;;  %v1588_v13 = vadd.f32 %v1978_v61, %v1573_v46 }
 0x8ba   :  { %v1982_v17 = vmul.f32 -1.442695, %v1589_v12 }
 0x8bb   :  { %v1981_v48 = vmul.f32 -1.442695, %v1588_v13 }
 0x8bc   :  { %2504 = vpow2.f32 %v1982_v17 }
 0x8bd   :  { %2506 = vpow2.f32 %v1981_v48 }
 0x8c2   :  { %v2501_v16 = vpop.eup %2500 }
 0x8c3   :  { %v2503_v20 = vpop.eup %2502  ;;  %v1607_v22 = vadd.f32 1.0, %v2501_v16 }
 0x8c4   :  { %v1606_v24 = vadd.f32 1.0, %v2503_v20 }
 0x8c5   :  { %2508 = vrcp.f32 %v1607_v22 }
 0x8c6   :  { %v2505_v25 = vpop.eup %2504  ;;  %2510 = vrcp.f32 %v1606_v24 }
 0x8c7   :  { %v2507_v29 = vpop.eup %2506  ;;  %v1609_v31 = vadd.f32 1.0, %v2505_v25 }
 0x8c8   :  { %v1608_v32 = vadd.f32 1.0, %v2507_v29 }
 0x8c9   :  { %2512 = vrcp.f32 %v1609_v31 }
 0x8ca   :  { %2514 = vrcp.f32 %v1608_v32 }
 0x8cb   :  { %2516 = vtanh.f32 %v1586_v1 }
 0x8cc   :  { %2518 = vtanh.f32 %v1587_v63  ;;  %v1989_v63 = vld [vmem:[%s2967_s1 + $0x1c8] ss:$0 sm:$0xff] }
 0x8cd   :  { %2520 = vtanh.f32 %v1588_v13 }
 0x8ce   :  { %2522 = vtanh.f32 %v1589_v12 }
 0x8cf   :  { %v2509_v33 = vpop.eup %2508 }
 0x8d0   :  { %v2511_v34 = vpop.eup %2510  ;;  %1624 = vrot.lane.b32.xlu1 %v2509_v33, %s2525_s16 }
 0x8d1   :  { %1622 = vrot.lane.b32.xlu0 %v2511_v34, %s2525_s16 }
 0x8d3   :  { %v2513_v35 = vpop.eup %2512 }
 0x8d4   :  { %v2515_v36 = vpop.eup %2514  ;;  %1628 = vrot.lane.b32.xlu1 %v2513_v35, %s2525_s16 }
 0x8d5   :  { %1626 = vrot.lane.b32.xlu0 %v2515_v36, %s2525_s16  ;;  %v2517_v38 = vpop.eup %2516 }
 0x8d6   :  { %v2519_v42 = vpop.eup %2518 }
 0x8d7   :  { %v2521_v52 = vpop.eup %2520 }
 0x8d8   :  { %v2523_v53 = vpop.eup %2522 }
 0x942   :  { %v1625_v37 = vpop.permute.xlu1 %1624 }
 0x943   :  { %v1623_v39 = vpop.permute.xlu0 %1622  ;;  %v1635_v49 = vmul.f32 %v2519_v42, %v1625_v37 }
 0x944   :  { %v1634_v45 = vmul.f32 %v2517_v38, %v1623_v39 }
 0x946   :  { %2272 = vmatprep.mubr.msk.f32.mxu1 %vm230_vm4, %v1634_v45  ;;  %v1629_v19 = vpop.permute.xlu1 %1628 }
 0x947   :  { %2273 = vmatmul.mubr.msk.f32.vlgmr.msra.gmra.mrb[12].mxu1 %vm230_vm4, %v1635_v49  ;;  %v1627_v23 = vpop.permute.xlu0 %1626  ;;  %v1637_v2 = vmul.f32 %v2523_v53, %v1629_v19 }
 0x948   :  { %v1636_v40 = vmul.f32 %v2521_v52, %v1627_v23 }
 0x94a   :  { %2275 = vmatprep.mubr.msk.f32.mxu1 %vm230_vm4, %v1636_v40 }
 0x94b   :  { %2276 = vmatmul.mubr.msk.f32.gmra.mrb[14].mxu1 %vm230_vm4, %v1637_v2 }
 0x94c   :  { %2286 = vmatprep.mubr.msk.f32.mxu1 %vm2527_vm11, %v2524_v27 }
 0xa1a   :  { %v2274_v3 = vpop.f32.mrb[12].mxu1 }
 0xa1b   :  { %v1726_v8 = vadd.f32 %v2274_v3, %v1983_v41  ;;  %v1720_v5 = vpop.f32.mrb[13].mxu1 }
 0xa1c   :  { %v1721_v56 = vadd.f32 %v1983_v41, %v1720_v5 }
 0xa1d   :  { %v1740_v44 = vadd.f32 %v1726_v8, %v2872_v50  ;;  %v1743_v50 = vld [vmem:[%s2967_s1 + $0x1a8] sm:$0xff] }
 0xa1e   :  { %v1739_v6 = vadd.f32 %v1721_v56, %v2875_v51  ;;  %v2277_v57 = vpop.f32.mrb[14].mxu1  ;;  %v1744_v51 = vld [vmem:[%s2967_s1 + $0x1b0] sm:$0xff] }
 0xa1f   :  { %v1736_v47 = vadd.f32 %v2277_v57, %v1983_v41  ;;  %v1730_v9 = vpop.f32.mrb[15].mxu1 }
 0xa20   :  { %v2397_v10 = vpack.c.bf16 %v1740_v44, %v1739_v6  ;;  %v1731_v43 = vadd.f32 %v1983_v41, %v1730_v9 }
 0xa21   :  { %v1742_v58 = vadd.f32 %v1736_v47, %v2882_v54  ;;  %v1745_v54 = vld [vmem:[%s2967_s1 + $0x1b8] sm:$0xff] }
 0xa22   :  { %v1741_v27 = vadd.f32 %v1731_v43, %v2885_v55  ;;  %2398 = vmatpush3.bf16.msra.mxu1 %v2397_v10  ;;  %v2403_v55 = vpack.c.bf16 %v1744_v51, %v1743_v50  ;;  %v2406_v28 = vpack.c.bf16 %v1746_v15, %v1745_v54 }
 0xa23   :  { %2399 = vmatprep.subr.bf16.mxu1 %v2526_v26 }
 0xa24   :  { %v2400_v59 = vpack.c.bf16 %v1742_v58, %v1741_v27  ;;  %2404 = vmatpush3.bf16.msra.mxu0 %v2403_v55 }
 0xa25   :  { %2405 = vmatprep.subr.bf16.mxu0 %v2526_v26 }
 0xa26   :  { %2401 = vmatpush3.bf16.msra.mxu1 %v2400_v59 }
 0xa28   :  { %2407 = vmatpush3.bf16.msra.mxu0 %v2406_v28 }
 0xa29   :  { %2287 = vmatmul.mubr.msk.f32.vlgmr.msra.gmra.mrb[16].mxu1 %vm230_vm4, %v1748_v60 }
 0xafc   :  { %v1818_v30 = vpop.f32.mrb[16].mxu1 }
 0xafd   :  { %1827 = vrot.lane.b32.xlu0 %v1818_v30, %s2525_s16  ;;  %v2288_v61 = vpop.f32.mrb[17].mxu1 }
 0xb6f   :  { %v1828_v62 = vpop.permute.xlu0 %1827 }
 0xb70   :  { %2298 = vmatmul.mubr.msk.f32.vlgmr.msra.gmra.mrb[20].mxu0 %vm230_vm4, %v1828_v62 }
 0xc43   :  { %v1897_v0 = vpop.f32.mrb[20].mxu0 }
 0xc44   :  { %v1898_v1 = vadd.f32 %v1989_v63, %v1897_v0  ;;  %v2299_v4 = vpop.f32.mrb[21].mxu0 }
 0xc46   :  { %1901 = vst [vmem:[%s2969_s2] sm:$0xff] %v1898_v1 }

</bundles_post_ra>
